<compile_context>
chip_gen: v7x
topology: tpu7x:2x2x1
jax: 0.10.0
libtpu: 0.0.40
codegen_flags: <defaults>
</compile_context>

<pallas_src>
import jax
import jax.numpy as jnp
from jax.experimental import pallas as pl
from jax.experimental.pallas import tpu as pltpu

H = 100        # hidden_dim / input_dim of the word vectors
HP = 128       # lane-padded hidden dim
Q_LEN = 5      # question length (forced in the reference forward)
Q_PAD = 8      # sublane-padded question length
T_LEN = 100    # text length (forced in the reference forward)
T_PAD = 104    # sublane-padded text length
VOCAB = 32     # small synthetic vocabulary for the response generator


# ----------------------------------------------------------------------------
# Fused kernel: question RNN + text RNN + response MLP in one invocation.
# ----------------------------------------------------------------------------
def _qa_fused_kernel(
    qx_ref, tx_ref,                                   # padded word sequences
    q_wih_ref, q_whh_ref, q_b_ref,                    # question encoder
    t_wih_ref, t_whh_ref, t_b_ref,                    # text encoder
    w1q_ref, w1t_ref, b1_ref, w2_ref, b2_ref,         # response generator
    outq_ref, outt_ref, outr_ref,                     # outputs (lane-dense)
    pq_ref, pt_ref,                                   # VMEM scratch: X@W_ih+b
):
    # Hoisted input projections: one well-shaped matmul per sequence.
    pq_ref[...] = (
        jnp.dot(qx_ref[...], q_wih_ref[...], preferred_element_type=jnp.float32)
        + q_b_ref[...]
    )
    pt_ref[...] = (
        jnp.dot(tx_ref[...], t_wih_ref[...], preferred_element_type=jnp.float32)
        + t_b_ref[...]
    )

    # Question recurrence: 5 steps, fully unrolled with static slices.
    hq = jnp.zeros((1, HP), jnp.float32)
    for t in range(Q_LEN):
        hq = jnp.tanh(
            pq_ref[pl.ds(t, 1), :]
            + jnp.dot(hq, q_whh_ref[...], preferred_element_type=jnp.float32)
        )

    # Text recurrence: 100 sequential steps, hidden state carried in vregs.
    def t_step(t, h):
        return jnp.tanh(
            pt_ref[pl.ds(t, 1), :]
            + jnp.dot(h, t_whh_ref[...], preferred_element_type=jnp.float32)
        )

    ht = jax.lax.fori_loop(0, T_LEN, t_step, jnp.zeros((1, HP), jnp.float32))

    outq_ref[...] = hq
    outt_ref[...] = ht

    # Response MLP: concat realized as two dots (W1 split into q/t halves).
    hidden = jnp.tanh(
        jnp.dot(hq, w1q_ref[...], preferred_element_type=jnp.float32)
        + jnp.dot(ht, w1t_ref[...], preferred_element_type=jnp.float32)
        + b1_ref[...]
    )
    outr_ref[...] = (
        jnp.dot(hidden, w2_ref[...], preferred_element_type=jnp.float32)
        + b2_ref[...]
    )


def _pad2(x, rows, cols):
    """Zero-pad a 2-D array up to (rows, cols)."""
    r, c = x.shape
    return jnp.zeros((rows, cols), x.dtype).at[:r, :c].set(x)


def qa_text_forward(params, encoded_question, encoded_text):
    """encoded_question: [5, 100], encoded_text: [100, 100] (float32)."""
    # Zero-pad everything to lane-dense (…,128) tiles.  Zeros guarantee the
    # padded lanes of the hidden state stay exactly 0 through the recurrence.
    qx = _pad2(encoded_question, Q_PAD, HP)
    tx = _pad2(encoded_text, T_PAD, HP)
    q_wih = _pad2(params["q_w_ih"], HP, HP)
    q_whh = _pad2(params["q_w_hh"], HP, HP)
    q_b = _pad2(params["q_b"], 1, HP)
    t_wih = _pad2(params["t_w_ih"], HP, HP)
    t_whh = _pad2(params["t_w_hh"], HP, HP)
    t_b = _pad2(params["t_b"], 1, HP)
    w1q = _pad2(params["r_w1"][:H], HP, HP)
    w1t = _pad2(params["r_w1"][H:], HP, HP)
    b1 = _pad2(params["r_b1"], 1, HP)
    w2 = _pad2(params["r_w2"], HP, HP)
    b2 = _pad2(params["r_b2"], 1, HP)

    def spec(shape):
        return pl.BlockSpec(shape, lambda i: (0, 0))

    outq, outt, outr = pl.pallas_call(
        _qa_fused_kernel,
        out_shape=(
            jax.ShapeDtypeStruct((1, HP), jnp.float32),
            jax.ShapeDtypeStruct((1, HP), jnp.float32),
            jax.ShapeDtypeStruct((1, HP), jnp.float32),
        ),
        grid_spec=pltpu.PrefetchScalarGridSpec(
            num_scalar_prefetch=0,
            grid=(1,),
            in_specs=[
                spec((Q_PAD, HP)), spec((T_PAD, HP)),
                spec((HP, HP)), spec((HP, HP)), spec((1, HP)),
                spec((HP, HP)), spec((HP, HP)), spec((1, HP)),
                spec((HP, HP)), spec((HP, HP)), spec((1, HP)),
                spec((HP, HP)), spec((1, HP)),
            ],
            out_specs=[spec((1, HP)), spec((1, HP)), spec((1, HP))],
            scratch_shapes=[
                pltpu.VMEM((Q_PAD, HP), jnp.float32),
                pltpu.VMEM((T_PAD, HP), jnp.float32),
            ],
        ),
        compiler_params=pltpu.CompilerParams(
            dimension_semantics=("arbitrary",)
        ),
    )(qx, tx, q_wih, q_whh, q_b, t_wih, t_whh, t_b, w1q, w1t, b1, w2, b2)

    # Slice the padded lanes back to the module's real dims.
    return outq[:, :H], outt[:, :H], outr[:, :VOCAB]


# ----------------------------------------------------------------------------
# Deterministic parameter construction (synthetic, matching declared shapes).
# ----------------------------------------------------------------------------
def init_params(key):
    ks = jax.random.split(key, 10)
    scale = 0.1
    return {
        # QuestionEncoder(input_dim=100, hidden_dim=100)
        "q_w_ih": scale * jax.random.normal(ks[0], (H, H), jnp.float32),
        "q_w_hh": scale * jax.random.normal(ks[1], (H, H), jnp.float32),
        "q_b": scale * jax.random.normal(ks[2], (1, H), jnp.float32),
        # TextEncoder(input_dim=100, hidden_dim=100)
        "t_w_ih": scale * jax.random.normal(ks[3], (H, H), jnp.float32),
        "t_w_hh": scale * jax.random.normal(ks[4], (H, H), jnp.float32),
        "t_b": scale * jax.random.normal(ks[5], (1, H), jnp.float32),
        # ResponseGenerator(input_dim=200, hidden_dim=100) + word projection
        "r_w1": scale * jax.random.normal(ks[6], (2 * H, H), jnp.float32),
        "r_b1": scale * jax.random.normal(ks[7], (1, H), jnp.float32),
        "r_w2": scale * jax.random.normal(ks[8], (H, VOCAB), jnp.float32),
        "r_b2": scale * jax.random.normal(ks[9], (1, VOCAB), jnp.float32),
    }


# ----------------------------------------------------------------------------
# Pure-JAX reference for a sanity check of kernel semantics.
# ----------------------------------------------------------------------------
def _rnn_ref(x_seq, w_ih, w_hh, b):
    h = jnp.zeros((1, x_seq.shape[-1]), jnp.float32)
    for t in range(x_seq.shape[0]):
        h = jnp.tanh(x_seq[t:t + 1] @ w_ih + h @ w_hh + b)
    return h


if __name__ == "__main__":
    key = jax.random.PRNGKey(0)
    k_params, k_q, k_t = jax.random.split(key, 3)
    params = init_params(k_params)

    # The reference forward replaces the encoded inputs with random 100-dim
    # word vectors: 5 for the question, 100 for the text.
    encoded_question = jax.random.uniform(k_q, (Q_LEN, H), jnp.float32)
    encoded_text = jax.random.uniform(k_t, (T_LEN, H), jnp.float32)

    fwd = jax.jit(qa_text_forward)
    out_question, out_text, out_response = fwd(
        params, encoded_question, encoded_text
    )
    jax.block_until_ready((out_question, out_text, out_response))

    # Correctness check against a pure-JAX reference.
    ref_q = _rnn_ref(encoded_question, params["q_w_ih"], params["q_w_hh"], params["q_b"])
    ref_t = _rnn_ref(encoded_text, params["t_w_ih"], params["t_w_hh"], params["t_b"])
    ref_r = jnp.tanh(jnp.concatenate([ref_q, ref_t], -1) @ params["r_w1"] + params["r_b1"])
    ref_r = ref_r @ params["r_w2"] + params["r_b2"]

    assert jnp.allclose(out_question, ref_q, atol=1e-4), "question encoder mismatch"
    assert jnp.allclose(out_text, ref_t, atol=1e-4), "text encoder mismatch"
    assert jnp.allclose(out_response, ref_r, atol=1e-4), "response generator mismatch"

    print("KERNEL_OK")
</pallas_src>

<mosaic_0001>
module attributes {stable_mosaic.version = 11 : i64} {
  func.func @_qa_fused_kernel(%arg0: i32, %arg1: memref<8x128xf32, #tpu.memory_space<vmem>>, %arg2: memref<104x128xf32, #tpu.memory_space<vmem>>, %arg3: memref<128x128xf32, #tpu.memory_space<vmem>>, %arg4: memref<128x128xf32, #tpu.memory_space<vmem>>, %arg5: memref<1x128xf32, #tpu.memory_space<vmem>>, %arg6: memref<128x128xf32, #tpu.memory_space<vmem>>, %arg7: memref<128x128xf32, #tpu.memory_space<vmem>>, %arg8: memref<1x128xf32, #tpu.memory_space<vmem>>, %arg9: memref<128x128xf32, #tpu.memory_space<vmem>>, %arg10: memref<128x128xf32, #tpu.memory_space<vmem>>, %arg11: memref<1x128xf32, #tpu.memory_space<vmem>>, %arg12: memref<128x128xf32, #tpu.memory_space<vmem>>, %arg13: memref<1x128xf32, #tpu.memory_space<vmem>>, %arg14: memref<1x128xf32, #tpu.memory_space<vmem>>, %arg15: memref<1x128xf32, #tpu.memory_space<vmem>>, %arg16: memref<1x128xf32, #tpu.memory_space<vmem>>, %arg17: memref<8x128xf32, #tpu.memory_space<vmem>>, %arg18: memref<104x128xf32, #tpu.memory_space<vmem>>) attributes {dimension_semantics = [#tpu.dimension_semantics<arbitrary>], iteration_bounds = array<i64: 1>, scalar_prefetch = 0 : i64, scratch_operands = 2 : i64, tpu.core_type = #tpu.core_type<tc>, window_params = [{pipeline_mode = #tpu.pipeline_mode<synchronous>, transform_indices = @transform_0, window_bounds = array<i64: 8, 128>}, {pipeline_mode = #tpu.pipeline_mode<synchronous>, transform_indices = @transform_1, window_bounds = array<i64: 104, 128>}, {pipeline_mode = #tpu.pipeline_mode<synchronous>, transform_indices = @transform_2, window_bounds = array<i64: 128, 128>}, {pipeline_mode = #tpu.pipeline_mode<synchronous>, transform_indices = @transform_3, window_bounds = array<i64: 128, 128>}, {pipeline_mode = #tpu.pipeline_mode<synchronous>, transform_indices = @transform_4, window_bounds = array<i64: 1, 128>}, {pipeline_mode = #tpu.pipeline_mode<synchronous>, transform_indices = @transform_5, window_bounds = array<i64: 128, 128>}, {pipeline_mode = #tpu.pipeline_mode<synchronous>, transform_indices = @transform_6, window_bounds = array<i64: 128, 128>}, {pipeline_mode = #tpu.pipeline_mode<synchronous>, transform_indices = @transform_7, window_bounds = array<i64: 1, 128>}, {pipeline_mode = #tpu.pipeline_mode<synchronous>, transform_indices = @transform_8, window_bounds = array<i64: 128, 128>}, {pipeline_mode = #tpu.pipeline_mode<synchronous>, transform_indices = @transform_9, window_bounds = array<i64: 128, 128>}, {pipeline_mode = #tpu.pipeline_mode<synchronous>, transform_indices = @transform_10, window_bounds = array<i64: 1, 128>}, {pipeline_mode = #tpu.pipeline_mode<synchronous>, transform_indices = @transform_11, window_bounds = array<i64: 128, 128>}, {pipeline_mode = #tpu.pipeline_mode<synchronous>, transform_indices = @transform_12, window_bounds = array<i64: 1, 128>}, {pipeline_mode = #tpu.pipeline_mode<synchronous>, transform_indices = @transform_13, window_bounds = array<i64: 1, 128>}, {pipeline_mode = #tpu.pipeline_mode<synchronous>, transform_indices = @transform_14, window_bounds = array<i64: 1, 128>}, {pipeline_mode = #tpu.pipeline_mode<synchronous>, transform_indices = @transform_15, window_bounds = array<i64: 1, 128>}]} {
    %c0 = arith.constant 0 : index
    %c0_0 = arith.constant 0 : index
    %0 = vector.load %arg1[%c0, %c0_0] : memref<8x128xf32, #tpu.memory_space<vmem>>, vector<8x128xf32>
    %c0_1 = arith.constant 0 : index
    %c0_2 = arith.constant 0 : index
    %1 = vector.load %arg3[%c0_1, %c0_2] : memref<128x128xf32, #tpu.memory_space<vmem>>, vector<128x128xf32>
    %cst = arith.constant dense<0.000000e+00> : vector<8x128xf32>
    %2 = tpu.matmul %0, %1, %cst {dimension_numbers = #tpu.dot_dimension_numbers<[1], [0], [0], [1], [0, 0, 1, 1], [], []>} : vector<8x128xf32>, vector<128x128xf32>, vector<8x128xf32> -> vector<8x128xf32>
    %c0_3 = arith.constant 0 : index
    %c0_4 = arith.constant 0 : index
    %3 = vector.load %arg5[%c0_3, %c0_4] : memref<1x128xf32, #tpu.memory_space<vmem>>, vector<1x128xf32>
    %4 = vector.broadcast %3 : vector<1x128xf32> to vector<8x128xf32>
    %5 = arith.addf %2, %4 : vector<8x128xf32>
    %c0_5 = arith.constant 0 : index
    %c0_6 = arith.constant 0 : index
    %6 = vector.load %arg17[%c0_5, %c0_6] : memref<8x128xf32, #tpu.memory_space<vmem>>, vector<8x128xf32>
    tpu.vector_store %arg17[%c0_5, %c0_6], %5 {strides = array<i32>} : memref<8x128xf32, #tpu.memory_space<vmem>>, vector<8x128xf32>,
    %c0_7 = arith.constant 0 : index
    %c0_8 = arith.constant 0 : index
    %7 = vector.load %arg2[%c0_7, %c0_8] : memref<104x128xf32, #tpu.memory_space<vmem>>, vector<104x128xf32>
    %c0_9 = arith.constant 0 : index
    %c0_10 = arith.constant 0 : index
    %8 = vector.load %arg6[%c0_9, %c0_10] : memref<128x128xf32, #tpu.memory_space<vmem>>, vector<128x128xf32>
    %cst_11 = arith.constant dense<0.000000e+00> : vector<104x128xf32>
    %9 = tpu.matmul %7, %8, %cst_11 {dimension_numbers = #tpu.dot_dimension_numbers<[1], [0], [0], [1], [0, 0, 1, 1], [], []>} : vector<104x128xf32>, vector<128x128xf32>, vector<104x128xf32> -> vector<104x128xf32>
    %c0_12 = arith.constant 0 : index
    %c0_13 = arith.constant 0 : index
    %10 = vector.load %arg8[%c0_12, %c0_13] : memref<1x128xf32, #tpu.memory_space<vmem>>, vector<1x128xf32>
    %11 = vector.broadcast %10 : vector<1x128xf32> to vector<104x128xf32>
    %12 = arith.addf %9, %11 : vector<104x128xf32>
    %c0_14 = arith.constant 0 : index
    %c0_15 = arith.constant 0 : index
    %13 = vector.load %arg18[%c0_14, %c0_15] : memref<104x128xf32, #tpu.memory_space<vmem>>, vector<104x128xf32>
    tpu.vector_store %arg18[%c0_14, %c0_15], %12 {strides = array<i32>} : memref<104x128xf32, #tpu.memory_space<vmem>>, vector<104x128xf32>,
    %cst_16 = arith.constant 0.000000e+00 : f32
    %14 = vector.broadcast %cst_16 : f32 to vector<1x128xf32>
    %c0_17 = arith.constant 0 : index
    %c0_18 = arith.constant 0 : index
    %15 = vector.load %arg17[%c0_17, %c0_18] : memref<8x128xf32, #tpu.memory_space<vmem>>, vector<1x128xf32>
    %c0_19 = arith.constant 0 : index
    %c0_20 = arith.constant 0 : index
    %16 = vector.load %arg4[%c0_19, %c0_20] : memref<128x128xf32, #tpu.memory_space<vmem>>, vector<128x128xf32>
    %cst_21 = arith.constant dense<0.000000e+00> : vector<1x128xf32>
    %17 = tpu.matmul %14, %16, %cst_21 {dimension_numbers = #tpu.dot_dimension_numbers<[1], [0], [0], [1], [0, 0, 1, 1], [], []>} : vector<1x128xf32>, vector<128x128xf32>, vector<1x128xf32> -> vector<1x128xf32>
    %18 = arith.addf %15, %17 : vector<1x128xf32>
    %19 = math.tanh %18 : vector<1x128xf32>
    %c1 = arith.constant 1 : index
    %c0_22 = arith.constant 0 : index
    %20 = vector.load %arg17[%c1, %c0_22] : memref<8x128xf32, #tpu.memory_space<vmem>>, vector<1x128xf32>
    %c0_23 = arith.constant 0 : index
    %c0_24 = arith.constant 0 : index
    %21 = vector.load %arg4[%c0_23, %c0_24] : memref<128x128xf32, #tpu.memory_space<vmem>>, vector<128x128xf32>
    %cst_25 = arith.constant dense<0.000000e+00> : vector<1x128xf32>
    %22 = tpu.matmul %19, %21, %cst_25 {dimension_numbers = #tpu.dot_dimension_numbers<[1], [0], [0], [1], [0, 0, 1, 1], [], []>} : vector<1x128xf32>, vector<128x128xf32>, vector<1x128xf32> -> vector<1x128xf32>
    %23 = arith.addf %20, %22 : vector<1x128xf32>
    %24 = math.tanh %23 : vector<1x128xf32>
    %c2 = arith.constant 2 : index
    %c0_26 = arith.constant 0 : index
    %25 = vector.load %arg17[%c2, %c0_26] : memref<8x128xf32, #tpu.memory_space<vmem>>, vector<1x128xf32>
    %c0_27 = arith.constant 0 : index
    %c0_28 = arith.constant 0 : index
    %26 = vector.load %arg4[%c0_27, %c0_28] : memref<128x128xf32, #tpu.memory_space<vmem>>, vector<128x128xf32>
    %cst_29 = arith.constant dense<0.000000e+00> : vector<1x128xf32>
    %27 = tpu.matmul %24, %26, %cst_29 {dimension_numbers = #tpu.dot_dimension_numbers<[1], [0], [0], [1], [0, 0, 1, 1], [], []>} : vector<1x128xf32>, vector<128x128xf32>, vector<1x128xf32> -> vector<1x128xf32>
    %28 = arith.addf %25, %27 : vector<1x128xf32>
    %29 = math.tanh %28 : vector<1x128xf32>
    %c3 = arith.constant 3 : index
    %c0_30 = arith.constant 0 : index
    %30 = vector.load %arg17[%c3, %c0_30] : memref<8x128xf32, #tpu.memory_space<vmem>>, vector<1x128xf32>
    %c0_31 = arith.constant 0 : index
    %c0_32 = arith.constant 0 : index
    %31 = vector.load %arg4[%c0_31, %c0_32] : memref<128x128xf32, #tpu.memory_space<vmem>>, vector<128x128xf32>
    %cst_33 = arith.constant dense<0.000000e+00> : vector<1x128xf32>
    %32 = tpu.matmul %29, %31, %cst_33 {dimension_numbers = #tpu.dot_dimension_numbers<[1], [0], [0], [1], [0, 0, 1, 1], [], []>} : vector<1x128xf32>, vector<128x128xf32>, vector<1x128xf32> -> vector<1x128xf32>
    %33 = arith.addf %30, %32 : vector<1x128xf32>
    %34 = math.tanh %33 : vector<1x128xf32>
    %c4 = arith.constant 4 : index
    %c0_34 = arith.constant 0 : index
    %35 = vector.load %arg17[%c4, %c0_34] : memref<8x128xf32, #tpu.memory_space<vmem>>, vector<1x128xf32>
    %c0_35 = arith.constant 0 : index
    %c0_36 = arith.constant 0 : index
    %36 = vector.load %arg4[%c0_35, %c0_36] : memref<128x128xf32, #tpu.memory_space<vmem>>, vector<128x128xf32>
    %cst_37 = arith.constant dense<0.000000e+00> : vector<1x128xf32>
    %37 = tpu.matmul %34, %36, %cst_37 {dimension_numbers = #tpu.dot_dimension_numbers<[1], [0], [0], [1], [0, 0, 1, 1], [], []>} : vector<1x128xf32>, vector<128x128xf32>, vector<1x128xf32> -> vector<1x128xf32>
    %38 = arith.addf %35, %37 : vector<1x128xf32>
    %39 = math.tanh %38 : vector<1x128xf32>
    %cst_38 = arith.constant 0.000000e+00 : f32
    %40 = vector.broadcast %cst_38 : f32 to vector<1x128xf32>
    %c0_i32 = arith.constant 0 : i32
    %c100_i32 = arith.constant 100 : i32
    %41 = arith.addi %c0_i32, %c100_i32 : i32
    %c1_i32 = arith.constant 1 : i32
    %42 = scf.for %arg19 = %c0_i32 to %41 step %c1_i32 iter_args(%arg20 = %40) -> (vector<1x128xf32>)  : i32 {
      %58 = arith.index_cast %arg19 : i32 to index
      %c0_59 = arith.constant 0 : index
      %59 = vector.load %arg18[%58, %c0_59] : memref<104x128xf32, #tpu.memory_space<vmem>>, vector<1x128xf32>
      %c0_60 = arith.constant 0 : index
      %c0_61 = arith.constant 0 : index
      %60 = vector.load %arg7[%c0_60, %c0_61] : memref<128x128xf32, #tpu.memory_space<vmem>>, vector<128x128xf32>
      %cst_62 = arith.constant dense<0.000000e+00> : vector<1x128xf32>
      %61 = tpu.matmul %arg20, %60, %cst_62 {dimension_numbers = #tpu.dot_dimension_numbers<[1], [0], [0], [1], [0, 0, 1, 1], [], []>} : vector<1x128xf32>, vector<128x128xf32>, vector<1x128xf32> -> vector<1x128xf32>
      %62 = arith.addf %59, %61 : vector<1x128xf32>
      %63 = math.tanh %62 : vector<1x128xf32>
      scf.yield %63 : vector<1x128xf32>
    }
    %c100_i32_39 = arith.constant 100 : i32
    %c0_40 = arith.constant 0 : index
    %c0_41 = arith.constant 0 : index
    %43 = vector.load %arg14[%c0_40, %c0_41] : memref<1x128xf32, #tpu.memory_space<vmem>>, vector<1x128xf32>
    tpu.vector_store %arg14[%c0_40, %c0_41], %39 {strides = array<i32>} : memref<1x128xf32, #tpu.memory_space<vmem>>, vector<1x128xf32>,
    %c0_42 = arith.constant 0 : index
    %c0_43 = arith.constant 0 : index
    %44 = vector.load %arg15[%c0_42, %c0_43] : memref<1x128xf32, #tpu.memory_space<vmem>>, vector<1x128xf32>
    tpu.vector_store %arg15[%c0_42, %c0_43], %42 {strides = array<i32>} : memref<1x128xf32, #tpu.memory_space<vmem>>, vector<1x128xf32>,
    %c0_44 = arith.constant 0 : index
    %c0_45 = arith.constant 0 : index
    %45 = vector.load %arg9[%c0_44, %c0_45] : memref<128x128xf32, #tpu.memory_space<vmem>>, vector<128x128xf32>
    %cst_46 = arith.constant dense<0.000000e+00> : vector<1x128xf32>
    %46 = tpu.matmul %39, %45, %cst_46 {dimension_numbers = #tpu.dot_dimension_numbers<[1], [0], [0], [1], [0, 0, 1, 1], [], []>} : vector<1x128xf32>, vector<128x128xf32>, vector<1x128xf32> -> vector<1x128xf32>
    %c0_47 = arith.constant 0 : index
    %c0_48 = arith.constant 0 : index
    %47 = vector.load %arg10[%c0_47, %c0_48] : memref<128x128xf32, #tpu.memory_space<vmem>>, vector<128x128xf32>
    %cst_49 = arith.constant dense<0.000000e+00> : vector<1x128xf32>
    %48 = tpu.matmul %42, %47, %cst_49 {dimension_numbers = #tpu.dot_dimension_numbers<[1], [0], [0], [1], [0, 0, 1, 1], [], []>} : vector<1x128xf32>, vector<128x128xf32>, vector<1x128xf32> -> vector<1x128xf32>
    %49 = arith.addf %46, %48 : vector<1x128xf32>
    %c0_50 = arith.constant 0 : index
    %c0_51 = arith.constant 0 : index
    %50 = vector.load %arg11[%c0_50, %c0_51] : memref<1x128xf32, #tpu.memory_space<vmem>>, vector<1x128xf32>
    %51 = arith.addf %49, %50 : vector<1x128xf32>
    %52 = math.tanh %51 : vector<1x128xf32>
    %c0_52 = arith.constant 0 : index
    %c0_53 = arith.constant 0 : index
    %53 = vector.load %arg12[%c0_52, %c0_53] : memref<128x128xf32, #tpu.memory_space<vmem>>, vector<128x128xf32>
    %cst_54 = arith.constant dense<0.000000e+00> : vector<1x128xf32>
    %54 = tpu.matmul %52, %53, %cst_54 {dimension_numbers = #tpu.dot_dimension_numbers<[1], [0], [0], [1], [0, 0, 1, 1], [], []>} : vector<1x128xf32>, vector<128x128xf32>, vector<1x128xf32> -> vector<1x128xf32>
    %c0_55 = arith.constant 0 : index
    %c0_56 = arith.constant 0 : index
    %55 = vector.load %arg13[%c0_55, %c0_56] : memref<1x128xf32, #tpu.memory_space<vmem>>, vector<1x128xf32>
    %56 = arith.addf %54, %55 : vector<1x128xf32>
    %c0_57 = arith.constant 0 : index
    %c0_58 = arith.constant 0 : index
    %57 = vector.load %arg16[%c0_57, %c0_58] : memref<1x128xf32, #tpu.memory_space<vmem>>, vector<1x128xf32>
    tpu.vector_store %arg16[%c0_57, %c0_58], %56 {strides = array<i32>} : memref<1x128xf32, #tpu.memory_space<vmem>>, vector<1x128xf32>,
    return
  }
  func.func @transform_0(%arg0: i32) -> (i32, i32) {
    %c0_i32 = arith.constant 0 : i32
    %c0_i32_0 = arith.constant 0 : i32
    %c0_i32_1 = arith.constant 0 : i32
    return %c0_i32, %c0_i32_0 : i32, i32
  }
  func.func @transform_1(%arg0: i32) -> (i32, i32) {
    %c0_i32 = arith.constant 0 : i32
    %c0_i32_0 = arith.constant 0 : i32
    %c0_i32_1 = arith.constant 0 : i32
    return %c0_i32, %c0_i32_0 : i32, i32
  }
  func.func @transform_2(%arg0: i32) -> (i32, i32) {
    %c0_i32 = arith.constant 0 : i32
    %c0_i32_0 = arith.constant 0 : i32
    %c0_i32_1 = arith.constant 0 : i32
    return %c0_i32, %c0_i32_0 : i32, i32
  }
  func.func @transform_3(%arg0: i32) -> (i32, i32) {
    %c0_i32 = arith.constant 0 : i32
    %c0_i32_0 = arith.constant 0 : i32
    %c0_i32_1 = arith.constant 0 : i32
    return %c0_i32, %c0_i32_0 : i32, i32
  }
  func.func @transform_4(%arg0: i32) -> (i32, i32) {
    %c0_i32 = arith.constant 0 : i32
    %c0_i32_0 = arith.constant 0 : i32
    %c0_i32_1 = arith.constant 0 : i32
    return %c0_i32, %c0_i32_0 : i32, i32
  }
  func.func @transform_5(%arg0: i32) -> (i32, i32) {
    %c0_i32 = arith.constant 0 : i32
    %c0_i32_0 = arith.constant 0 : i32
    %c0_i32_1 = arith.constant 0 : i32
    return %c0_i32, %c0_i32_0 : i32, i32
  }
  func.func @transform_6(%arg0: i32) -> (i32, i32) {
    %c0_i32 = arith.constant 0 : i32
    %c0_i32_0 = arith.constant 0 : i32
    %c0_i32_1 = arith.constant 0 : i32
    return %c0_i32, %c0_i32_0 : i32, i32
  }
  func.func @transform_7(%arg0: i32) -> (i32, i32) {
    %c0_i32 = arith.constant 0 : i32
    %c0_i32_0 = arith.constant 0 : i32
    %c0_i32_1 = arith.constant 0 : i32
    return %c0_i32, %c0_i32_0 : i32, i32
  }
  func.func @transform_8(%arg0: i32) -> (i32, i32) {
    %c0_i32 = arith.constant 0 : i32
    %c0_i32_0 = arith.constant 0 : i32
    %c0_i32_1 = arith.constant 0 : i32
    return %c0_i32, %c0_i32_0 : i32, i32
  }
  func.func @transform_9(%arg0: i32) -> (i32, i32) {
    %c0_i32 = arith.constant 0 : i32
    %c0_i32_0 = arith.constant 0 : i32
    %c0_i32_1 = arith.constant 0 : i32
    return %c0_i32, %c0_i32_0 : i32, i32
  }
  func.func @transform_10(%arg0: i32) -> (i32, i32) {
    %c0_i32 = arith.constant 0 : i32
    %c0_i32_0 = arith.constant 0 : i32
    %c0_i32_1 = arith.constant 0 : i32
    return %c0_i32, %c0_i32_0 : i32, i32
  }
  func.func @transform_11(%arg0: i32) -> (i32, i32) {
    %c0_i32 = arith.constant 0 : i32
    %c0_i32_0 = arith.constant 0 : i32
    %c0_i32_1 = arith.constant 0 : i32
    return %c0_i32, %c0_i32_0 : i32, i32
  }
  func.func @transform_12(%arg0: i32) -> (i32, i32) {
    %c0_i32 = arith.constant 0 : i32
    %c0_i32_0 = arith.constant 0 : i32
    %c0_i32_1 = arith.constant 0 : i32
    return %c0_i32, %c0_i32_0 : i32, i32
  }
  func.func @transform_13(%arg0: i32) -> (i32, i32) {
    %c0_i32 = arith.constant 0 : i32
    %c0_i32_0 = arith.constant 0 : i32
    %c0_i32_1 = arith.constant 0 : i32
    return %c0_i32, %c0_i32_0 : i32, i32
  }
  func.func @transform_14(%arg0: i32) -> (i32, i32) {
    %c0_i32 = arith.constant 0 : i32
    %c0_i32_0 = arith.constant 0 : i32
    %c0_i32_1 = arith.constant 0 : i32
    return %c0_i32, %c0_i32_0 : i32, i32
  }
  func.func @transform_15(%arg0: i32) -> (i32, i32) {
    %c0_i32 = arith.constant 0 : i32
    %c0_i32_0 = arith.constant 0 : i32
    %c0_i32_1 = arith.constant 0 : i32
    return %c0_i32, %c0_i32_0 : i32, i32
  }
}

</mosaic_0001>

<bundles_post_ra>
// kernel: qa_text_forward.1
= control target key start
LH: loop header
LB: loop body
LE: loop exit
PB: predicated region body
PF: predicated region fallthrough
CT: control target
= control target key end

     0   :  { %21 = vsyncpa [#allocation5], 0  ;;  %s2856_s0 = inlined_call_operand.vmem [shape: f32[8,128], index: 0, kind: input, shape index: {}]   ;;  %s2857_s1 = inlined_call_operand.vmem [shape: f32[104,128], index: 1, kind: input, shape index: {}]   ;;  %s2858_s2 = inlined_call_operand.vmem [shape: f32[128,128], index: 2, kind: input, shape index: {}]   ;;  %s2859_s3 = inlined_call_operand.vmem [shape: f32[128,128], index: 3, kind: input, shape index: {}]   ;;  %s2860_s4 = inlined_call_operand.vmem [shape: f32[1,128], index: 4, kind: input, shape index: {}]   ;;  %s2861_s5 = inlined_call_operand.vmem [shape: f32[128,128], index: 5, kind: input, shape index: {}]   ;;  %s2862_s6 = inlined_call_operand.vmem [shape: f32[128,128], index: 6, kind: input, shape index: {}]   ;;  %s2863_s7 = inlined_call_operand.vmem [shape: f32[1,128], index: 7, kind: input, shape index: {}]   ;;  %s2864_s8 = inlined_call_operand.vmem [shape: f32[128,128], index: 8, kind: input, shape index: {}]   ;;  %s2865_s9 = inlined_call_operand.vmem [shape: f32[128,128], index: 9, kind: input, shape index: {}]   ;;  %s2866_s10 = inlined_call_operand.vmem [shape: f32[1,128], index: 10, kind: input, shape index: {}]   ;;  %s2867_s11 = inlined_call_operand.vmem [shape: f32[128,128], index: 11, kind: input, shape index: {}]   ;;  %s2868_s12 = inlined_call_operand.vmem [shape: f32[1,128], index: 12, kind: input, shape index: {}]   ;;  %s2869_s13 = inlined_call_operand.hbm [shape: f32[1,128], index: 13, kind: output, shape index: {0}]   ;;  %s2870_s14 = inlined_call_operand.hbm [shape: f32[1,128], index: 14, kind: output, shape index: {1}]   ;;  %s2871_s15 = inlined_call_operand.hbm [shape: f32[1,128], index: 15, kind: output, shape index: {2}]  }
   0x1   :  { %22 = vsyncpa [#allocation7], 0  ;;  %v50_v0 = vld [vmem:[%s2858_s2] sm:$0xff]  ;;  %v51_v1 = vld [vmem:[%s2858_s2 + $0x8] sm:$0xff]  ;;  %v2127_v2 = vmov 0.0|0.0   ;;  %vm2128_vm0 = vmmov 0  }
   0x2   :  { %1738 = vmatprep.subr.bf16.mxu0 %v2127_v2  ;;  %v1739_v3 = vpack.c.bf16 %v51_v1, %v50_v0  ;;  %v52_v4 = vld [vmem:[%s2858_s2 + $0x10] sm:$0xff]  ;;  %v53_v5 = vld [vmem:[%s2858_s2 + $0x18] sm:$0xff]  ;;  %1762 = vmatprep.subr.bf16.mxu1 %v2127_v2  ;;  %v2129_v6 = vmov 0.0   ;;  %v54_v8 = vld [vmem:[%s2858_s2 + $0x20] sm:$0xff] }
   0x3   :  { %1349 = vmatprep.mubr.msk.f32.mxu0 %vm2128_vm0, %v2129_v6  ;;  %1384 = vmatprep.mubr.msk.f32.mxu1 %vm2128_vm0, %v2129_v6  ;;  %v1742_v7 = vpack.c.bf16 %v53_v5, %v52_v4  ;;  %v55_v9 = vld [vmem:[%s2858_s2 + $0x28] sm:$0xff]  ;;  %v56_v11 = vld [vmem:[%s2858_s2 + $0x30] sm:$0xff]  ;;  %v57_v12 = vld [vmem:[%s2858_s2 + $0x38] sm:$0xff] }
   0x4   :  { %1740 = vmatpush3.bf16.msra.mxu0 %v1739_v3  ;;  %v1745_v10 = vpack.c.bf16 %v55_v9, %v54_v8  ;;  %v1748_v13 = vpack.c.bf16 %v57_v12, %v56_v11  ;;  %v58_v14 = vld [vmem:[%s2858_s2 + $0x40] sm:$0xff]  ;;  %v158_v16 = vld [vmem:[%s2861_s5 + $0x8] sm:$0xff]  ;;  %v159_v19 = vld [vmem:[%s2861_s5 + $0x10] sm:$0xff] }
   0x5   :  { %1741 = vmatprep.subr.bf16.mxu0 %v2127_v2  ;;  %v157_v15 = vld [vmem:[%s2861_s5] sm:$0xff]  ;;  %v59_v17 = vld [vmem:[%s2858_s2 + $0x48] sm:$0xff]  ;;  %v160_v20 = vld [vmem:[%s2861_s5 + $0x18] sm:$0xff] }
   0x6   :  { %v1763_v18 = vpack.c.bf16 %v158_v16, %v157_v15  ;;  %v1766_v21 = vpack.c.bf16 %v160_v20, %v159_v19  ;;  %v1751_v22 = vpack.c.bf16 %v59_v17, %v58_v14  ;;  %v161_v23 = vld [vmem:[%s2861_s5 + $0x20] sm:$0xff]  ;;  %v162_v24 = vld [vmem:[%s2861_s5 + $0x28] sm:$0xff]  ;;  %v60_v25 = vld [vmem:[%s2858_s2 + $0x50] sm:$0xff] }
   0x7   :  { %v61_v26 = vld [vmem:[%s2858_s2 + $0x58] sm:$0xff]  ;;  %v1769_v27 = vpack.c.bf16 %v162_v24, %v161_v23  ;;  %v163_v29 = vld [vmem:[%s2861_s5 + $0x30] sm:$0xff]  ;;  %v62_v31 = vld [vmem:[%s2858_s2 + $0x60] sm:$0xff] }
   0x8   :  { %1743 = vmatpush3.bf16.msra.mxu0 %v1742_v7  ;;  %1764 = vmatpush3.bf16.msra.mxu1 %v1763_v18  ;;  %v1754_v28 = vpack.c.bf16 %v61_v26, %v60_v25  ;;  %v164_v30 = vld [vmem:[%s2861_s5 + $0x38] sm:$0xff]  ;;  %v63_v32 = vld [vmem:[%s2858_s2 + $0x68] sm:$0xff]  ;;  %v165_v35 = vld [vmem:[%s2861_s5 + $0x40] sm:$0xff] }
   0x9   :  { %1744 = vmatprep.subr.bf16.mxu0 %v2127_v2  ;;  %1765 = vmatprep.subr.bf16.mxu1 %v2127_v2  ;;  %v1772_v33 = vpack.c.bf16 %v164_v30, %v163_v29  ;;  %v1757_v34 = vpack.c.bf16 %v63_v32, %v62_v31  ;;  %v166_v36 = vld [vmem:[%s2861_s5 + $0x48] sm:$0xff]  ;;  %v64_v37 = vld [vmem:[%s2858_s2 + $0x70] sm:$0xff]  ;;  %v65_v38 = vld [vmem:[%s2858_s2 + $0x78] sm:$0xff] }
   0xa   :  { %v1775_v39 = vpack.c.bf16 %v166_v36, %v165_v35  ;;  %v1760_v40 = vpack.c.bf16 %v65_v38, %v64_v37  ;;  %v167_v41 = vld [vmem:[%s2861_s5 + $0x50] sm:$0xff]  ;;  %v168_v42 = vld [vmem:[%s2861_s5 + $0x58] sm:$0xff]  ;;  %v324_v43 = vld [vmem:[%s2859_s3] sm:$0xff] }
   0xb   :  { %v325_v44 = vld [vmem:[%s2859_s3 + $0x8] sm:$0xff]  ;;  %v1778_v45 = vpack.c.bf16 %v168_v42, %v167_v41  ;;  %v49_v46 = vld [vmem:[%s2856_s0] sm:$0xff]  ;;  %v326_v50 = vld [vmem:[%s2859_s3 + $0x10] sm:$0xff] }
   0xc   :  { %1746 = vmatpush3.bf16.msra.mxu0 %v1745_v10  ;;  %1767 = vmatpush3.bf16.msra.mxu1 %v1766_v21  ;;  %v2326_v47 = vpack.c.bf16 %v325_v44, %v324_v43  ;;  %v169_v48 = vld [vmem:[%s2861_s5 + $0x60] sm:$0xff]  ;;  %v170_v49 = vld [vmem:[%s2861_s5 + $0x68] sm:$0xff]  ;;  %v327_v51 = vld [vmem:[%s2859_s3 + $0x18] sm:$0xff] }
   0xd   :  { %1747 = vmatprep.subr.bf16.mxu0 %v2127_v2  ;;  %1768 = vmatprep.subr.bf16.mxu1 %v2127_v2  ;;  %v1781_v52 = vpack.c.bf16 %v170_v49, %v169_v48  ;;  %v2343_v53 = vpack.c.bf16 %v327_v51, %v326_v50  ;;  %v171_v54 = vld [vmem:[%s2861_s5 + $0x70] sm:$0xff]  ;;  %v172_v55 = vld [vmem:[%s2861_s5 + $0x78] sm:$0xff]  ;;  %v328_v56 = vld [vmem:[%s2859_s3 + $0x20] sm:$0xff] }
   0xe   :  { %v329_v57 = vld [vmem:[%s2859_s3 + $0x28] sm:$0xff]  ;;  %v1784_v58 = vpack.c.bf16 %v172_v55, %v171_v54  ;;  %v330_v60 = vld [vmem:[%s2859_s3 + $0x30] sm:$0xff]  ;;  %v331_v61 = vld [vmem:[%s2859_s3 + $0x38] sm:$0xff] }
   0xf   :  { %v2362_v59 = vpack.c.bf16 %v329_v57, %v328_v56  ;;  %v144_v62 = vld [vmem:[%s2857_s1] sm:$0xff]  ;;  %v2376_v63 = vpack.c.bf16 %v331_v61, %v330_v60  ;;  %v333_v1 = vld [vmem:[%s2859_s3 + $0x48] sm:$0xff]  ;;  %v334_v5 = vld [vmem:[%s2859_s3 + $0x50] sm:$0xff] }
  0x10   :  { %1749 = vmatpush3.bf16.msra.mxu0 %v1748_v13  ;;  %1770 = vmatpush3.bf16.msra.mxu1 %v1769_v27  ;;  %v332_v0 = vld [vmem:[%s2859_s3 + $0x40] sm:$0xff]  ;;  %v145_v3 = vld [vmem:[%s2857_s1 + $0x8] sm:$0xff]  ;;  %v335_v7 = vld [vmem:[%s2859_s3 + $0x58] sm:$0xff] }
  0x11   :  { %1750 = vmatprep.subr.bf16.mxu0 %v2127_v2  ;;  %1771 = vmatprep.subr.bf16.mxu1 %v2127_v2  ;;  %v2393_v4 = vpack.c.bf16 %v333_v1, %v332_v0  ;;  %v2407_v8 = vpack.c.bf16 %v335_v7, %v334_v5  ;;  %v336_v9 = vld [vmem:[%s2859_s3 + $0x60] sm:$0xff]  ;;  %v337_v10 = vld [vmem:[%s2859_s3 + $0x68] sm:$0xff]  ;;  %v338_v12 = vld [vmem:[%s2859_s3 + $0x70] sm:$0xff] }
  0x12   :  { %v2419_v11 = vpack.c.bf16 %v337_v10, %v336_v9  ;;  %v339_v13 = vld [vmem:[%s2859_s3 + $0x78] sm:$0xff]  ;;  %v146_v15 = vld [vmem:[%s2857_s1 + $0x10] sm:$0xff]  ;;  %v148_v17 = vld [vmem:[%s2857_s1 + $0x20] sm:$0xff] }
  0x13   :  { %v2431_v14 = vpack.c.bf16 %v339_v13, %v338_v12  ;;  %v147_v16 = vld [vmem:[%s2857_s1 + $0x18] sm:$0xff]  ;;  %v149_v18 = vld [vmem:[%s2857_s1 + $0x28] sm:$0xff]  ;;  %v150_v19 = vld [vmem:[%s2857_s1 + $0x30] sm:$0xff] }
  0x14   :  { %1752 = vmatpush3.bf16.msra.mxu0 %v1751_v22  ;;  %1773 = vmatpush3.bf16.msra.mxu1 %v1772_v33  ;;  %v151_v20 = vld [vmem:[%s2857_s1 + $0x38] sm:$0xff]  ;;  %v152_v21 = vld [vmem:[%s2857_s1 + $0x40] sm:$0xff]  ;;  %v153_v22 = vld [vmem:[%s2857_s1 + $0x48] sm:$0xff] }
  0x15   :  { %1753 = vmatprep.subr.bf16.mxu0 %v2127_v2  ;;  %1774 = vmatprep.subr.bf16.mxu1 %v2127_v2  ;;  %v154_v23 = vld [vmem:[%s2857_s1 + $0x50] sm:$0xff]  ;;  %v155_v24 = vld [vmem:[%s2857_s1 + $0x58] sm:$0xff]  ;;  %v156_v25 = vld [vmem:[%s2857_s1 + $0x60] sm:$0xff]  ;;  %s2576_s1 = smov 0  }
  0x16   :  { %v1116_v26 = vld [vmem:[%s2860_s4] ss:$0 sm:$0xff] }
  0x17   :  { %v2525_v30 = vld [vmem:[%s2863_s7] ss:$0 sm:$0xff] }
  0x18   :  { %1755 = vmatpush3.bf16.msra.mxu0 %v1754_v28  ;;  %1776 = vmatpush3.bf16.msra.mxu1 %v1775_v39 }
  0x19   :  { %1756 = vmatprep.subr.bf16.mxu0 %v2127_v2  ;;  %1777 = vmatprep.subr.bf16.mxu1 %v2127_v2 }
  0x1c   :  { %1758 = vmatpush3.bf16.msra.mxu0 %v1757_v34  ;;  %1779 = vmatpush3.bf16.msra.mxu1 %v1778_v45 }
  0x1d   :  { %1759 = vmatprep.subr.bf16.mxu0 %v2127_v2  ;;  %1780 = vmatprep.subr.bf16.mxu1 %v2127_v2 }
  0x20   :  { %1761 = vmatpush3.bf16.msra.mxu0 %v1760_v40  ;;  %1782 = vmatpush3.bf16.msra.mxu1 %v1781_v52 }
  0x21   :  { %1786 = vmatprep.subr.bf16.mxu0 %v2127_v2  ;;  %1783 = vmatprep.subr.bf16.mxu1 %v2127_v2 }
  0x23   :  { %1350 = vmatmul.mubr.f32.vlgmr.msra.gmra.mrb[0].mxu0 %v49_v46 }
  0x24   :  { %1788 = vmatpush3.bf16.msra.mxu0 %v2326_v47  ;;  %1455 = vmatprep.mubr.msk.f32.mxu0 %vm2128_vm0, %v2129_v6 }
  0x25   :  { %1789 = vmatprep.subr.bf16.mxu0 %v2127_v2  ;;  %1785 = vmatpush3.bf16.msra.mxu1 %v1784_v58 }
  0x26   :  { %1810 = vmatprep.subr.bf16.mxu1 %v2127_v2 }
  0x28   :  { %1791 = vmatpush3.bf16.msra.mxu0 %v2343_v53  ;;  %1385 = vmatmul.mubr.f32.vlgmr.msra.gmra.mrb[0].mxu1 %v144_v62 }
  0x29   :  { %1792 = vmatprep.subr.bf16.mxu0 %v2127_v2  ;;  %1812 = vmatpush3.bf16.msra.mxu1 %v2326_v47 }
  0x2a   :  { %1387 = vmatprep.mubr.msk.f32.mxu1 %vm2128_vm0, %v2129_v6  ;;  %1813 = vmatprep.subr.bf16.mxu1 %v2127_v2 }
  0x2c   :  { %1794 = vmatpush3.bf16.msra.mxu0 %v2362_v59  ;;  %1388 = vmatmul.mubr.f32.gmra.mrb[2].mxu1 %v145_v3 }
  0x2d   :  { %1795 = vmatprep.subr.bf16.mxu0 %v2127_v2  ;;  %1390 = vmatprep.mubr.msk.f32.mxu1 %vm2128_vm0, %v2129_v6 }
  0x2e   :  { %1815 = vmatpush3.bf16.msra.mxu1 %v2343_v53 }
  0x2f   :  { %1816 = vmatprep.subr.bf16.mxu1 %v2127_v2 }
  0x30   :  { %1797 = vmatpush3.bf16.msra.mxu0 %v2376_v63  ;;  %1391 = vmatmul.mubr.f32.gmra.mrb[4].mxu1 %v146_v15 }
  0x31   :  { %1798 = vmatprep.subr.bf16.mxu0 %v2127_v2  ;;  %1393 = vmatprep.mubr.msk.f32.mxu1 %vm2128_vm0, %v2129_v6 }
  0x32   :  { %1818 = vmatpush3.bf16.msra.mxu1 %v2362_v59 }
  0x33   :  { %1819 = vmatprep.subr.bf16.mxu1 %v2127_v2 }
  0x34   :  { %1800 = vmatpush3.bf16.msra.mxu0 %v2393_v4  ;;  %1394 = vmatmul.mubr.f32.gmra.mrb[6].mxu1 %v147_v16 }
  0x35   :  { %1801 = vmatprep.subr.bf16.mxu0 %v2127_v2  ;;  %1396 = vmatprep.mubr.msk.f32.mxu1 %vm2128_vm0, %v2129_v6 }
  0x36   :  { %1821 = vmatpush3.bf16.msra.mxu1 %v2376_v63 }
  0x37   :  { %1822 = vmatprep.subr.bf16.mxu1 %v2127_v2 }
  0x38   :  { %1803 = vmatpush3.bf16.msra.mxu0 %v2407_v8  ;;  %1397 = vmatmul.mubr.f32.gmra.mrb[8].mxu1 %v148_v17 }
  0x39   :  { %1804 = vmatprep.subr.bf16.mxu0 %v2127_v2  ;;  %1399 = vmatprep.mubr.msk.f32.mxu1 %vm2128_vm0, %v2129_v6 }
  0x3a   :  { %1824 = vmatpush3.bf16.msra.mxu1 %v2393_v4 }
  0x3b   :  { %1825 = vmatprep.subr.bf16.mxu1 %v2127_v2 }
  0x3c   :  { %1806 = vmatpush3.bf16.msra.mxu0 %v2419_v11  ;;  %1400 = vmatmul.mubr.f32.gmra.mrb[10].mxu1 %v149_v18 }
  0x3d   :  { %1807 = vmatprep.subr.bf16.mxu0 %v2127_v2  ;;  %1402 = vmatprep.mubr.msk.f32.mxu1 %vm2128_vm0, %v2129_v6 }
  0x3e   :  { %1827 = vmatpush3.bf16.msra.mxu1 %v2407_v8 }
  0x3f   :  { %1828 = vmatprep.subr.bf16.mxu1 %v2127_v2 }
  0x40   :  { %1809 = vmatpush3.bf16.msra.mxu0 %v2431_v14  ;;  %1403 = vmatmul.mubr.f32.gmra.mrb[12].mxu1 %v150_v19 }
  0x41   :  { %1834 = vmatprep.subr.bf16.mxu0 %v2127_v2  ;;  %1405 = vmatprep.mubr.msk.f32.mxu1 %vm2128_vm0, %v2129_v6 }
  0x42   :  { %1830 = vmatpush3.bf16.msra.mxu1 %v2419_v11 }
  0x43   :  { %1456 = vmatmul.mubr.f32.vlgmr.msra.gmra.mrb[2].mxu0 %v2129_v6  ;;  %1831 = vmatprep.subr.bf16.mxu1 %v2127_v2 }
  0x44   :  { %1836 = vmatpush3.bf16.msra.mxu0 %v2326_v47  ;;  %1525 = vmatprep.mubr.msk.f32.mxu0 %vm2128_vm0, %v2129_v6 }
  0x45   :  { %1837 = vmatprep.subr.bf16.mxu0 %v2127_v2  ;;  %1406 = vmatmul.mubr.f32.gmra.mrb[14].mxu1 %v151_v20 }
  0x46   :  { %1833 = vmatpush3.bf16.msra.mxu1 %v2431_v14  ;;  %1408 = vmatprep.mubr.msk.f32.mxu1 %vm2128_vm0, %v2129_v6 }
  0x47   :  { %1858 = vmatprep.subr.bf16.mxu1 %v2127_v2 }
  0x48   :  { %1839 = vmatpush3.bf16.msra.mxu0 %v2343_v53 }
  0x49   :  { %1840 = vmatprep.subr.bf16.mxu0 %v2127_v2  ;;  %1409 = vmatmul.mubr.f32.gmra.mrb[16].mxu1 %v152_v21 }
  0x4a   :  { %1411 = vmatprep.mubr.msk.f32.mxu1 %vm2128_vm0, %v2129_v6 }
  0x4c   :  { %1842 = vmatpush3.bf16.msra.mxu0 %v2362_v59 }
  0x4d   :  { %1843 = vmatprep.subr.bf16.mxu0 %v2127_v2  ;;  %1412 = vmatmul.mubr.f32.gmra.mrb[18].mxu1 %v153_v22 }
  0x4e   :  { %1414 = vmatprep.mubr.msk.f32.mxu1 %vm2128_vm0, %v2129_v6 }
  0x50   :  { %1845 = vmatpush3.bf16.msra.mxu0 %v2376_v63 }
  0x51   :  { %1846 = vmatprep.subr.bf16.mxu0 %v2127_v2  ;;  %1415 = vmatmul.mubr.f32.gmra.mrb[20].mxu1 %v154_v23 }
  0x52   :  { %1417 = vmatprep.mubr.msk.f32.mxu1 %vm2128_vm0, %v2129_v6 }
  0x54   :  { %1848 = vmatpush3.bf16.msra.mxu0 %v2393_v4 }
  0x55   :  { %1849 = vmatprep.subr.bf16.mxu0 %v2127_v2  ;;  %1418 = vmatmul.mubr.f32.gmra.mrb[22].mxu1 %v155_v24 }
  0x56   :  { %1420 = vmatprep.mubr.msk.f32.mxu1 %vm2128_vm0, %v2129_v6 }
  0x58   :  { %1851 = vmatpush3.bf16.msra.mxu0 %v2407_v8 }
  0x59   :  { %1852 = vmatprep.subr.bf16.mxu0 %v2127_v2  ;;  %1421 = vmatmul.mubr.f32.gmra.mrb[24].mxu1 %v156_v25 }
  0x5a   :  { %1490 = vmatprep.mubr.msk.f32.mxu1 %vm2128_vm0, %v2129_v6 }
  0x5c   :  { %1854 = vmatpush3.bf16.msra.mxu0 %v2419_v11 }
  0x5d   :  { %1855 = vmatprep.subr.bf16.mxu0 %v2127_v2 }
  0x60   :  { %1857 = vmatpush3.bf16.msra.mxu0 %v2431_v14 }
  0x61   :  { %1882 = vmatprep.subr.bf16.mxu0 %v2127_v2 }
  0xf6   :  { %v139_v27 = vpop.f32.mrb[0].mxu0 }
  0xf7   :  { %v140_v28 = vadd.f32 %v1116_v26, %v139_v27  ;;  %v1351_v29 = vpop.f32.mrb[1].mxu0 }
  0xf9   :  { %143 = vst [vmem:[#allocation2] sm:$0xff] %v140_v28 }
  0xfb   :  { %v246_v31 = vpop.f32.mrb[0].mxu1 }
  0xfc   :  { %v247_v32 = vadd.f32 %v2525_v30, %v246_v31  ;;  %v1386_v33 = vpop.f32.mrb[1].mxu1 }
  0xfd   :  { %v2119_v33 = vmov 0.0  }
  0xfe   :  { %310 = vst [vmem:[#allocation3] sm:$0xff] %v247_v32 }
  0xff   :  { %v251_v34 = vpop.f32.mrb[2].mxu1 }
 0x100   :  { %v252_v35 = vadd.f32 %v2525_v30, %v251_v34  ;;  %v1389_v36 = vpop.f32.mrb[3].mxu1  ;;  %v323_v37 = vld [vmem:[#allocation2] sm:$0x1]  ;;  %v412_v21 = vld [vmem:[#allocation2 + $0x1] sm:$0x1] }
 0x102   :  { %311 = vst [vmem:[#allocation3 + $0x8] sm:$0xff] %v252_v35 }
 0x103   :  { %v256_v42 = vpop.f32.mrb[4].mxu1 }
 0x104   :  { %v257_v43 = vadd.f32 %v2525_v30, %v256_v42  ;;  %v1392_v44 = vpop.f32.mrb[5].mxu1 }
 0x106   :  { %312 = vst [vmem:[#allocation3 + $0x10] sm:$0xff] %v257_v43 }
 0x107   :  { %v261_v45 = vpop.f32.mrb[6].mxu1 }
 0x108   :  { %v262_v46 = vadd.f32 %v2525_v30, %v261_v45  ;;  %v1395_v48 = vpop.f32.mrb[7].mxu1 }
 0x10a   :  { %313 = vst [vmem:[#allocation3 + $0x18] sm:$0xff] %v262_v46 }
 0x10b   :  { %v266_v49 = vpop.f32.mrb[8].mxu1 }
 0x10c   :  { %v267_v50 = vadd.f32 %v2525_v30, %v266_v49  ;;  %v1398_v51 = vpop.f32.mrb[9].mxu1 }
 0x10e   :  { %314 = vst [vmem:[#allocation3 + $0x20] sm:$0xff] %v267_v50 }
 0x10f   :  { %v271_v52 = vpop.f32.mrb[10].mxu1 }
 0x110   :  { %v272_v54 = vadd.f32 %v2525_v30, %v271_v52  ;;  %v1401_v55 = vpop.f32.mrb[11].mxu1 }
 0x112   :  { %315 = vst [vmem:[#allocation3 + $0x28] sm:$0xff] %v272_v54 }
 0x113   :  { %v276_v56 = vpop.f32.mrb[12].mxu1 }
 0x114   :  { %v277_v57 = vadd.f32 %v2525_v30, %v276_v56  ;;  %v1404_v58 = vpop.f32.mrb[13].mxu1 }
 0x116   :  { %v406_v38 = vpop.f32.mrb[2].mxu0  ;;  %316 = vst [vmem:[#allocation3 + $0x30] sm:$0xff] %v277_v57 }
 0x117   :  { %v410_v39 = vadd.f32 %v406_v38, %v323_v37  ;;  %v1457_v40 = vpop.f32.mrb[3].mxu0 }
 0x118   :  { %v281_v60 = vpop.f32.mrb[14].mxu1 }
 0x119   :  { %2027 = vtanh.f32 %v410_v39  ;;  %v282_v61 = vadd.f32 %v2525_v30, %v281_v60  ;;  %v1407_v62 = vpop.f32.mrb[15].mxu1 }
 0x11b   :  { %317 = vst [vmem:[#allocation3 + $0x38] sm:$0xff] %v282_v61 }
 0x11c   :  { %v286_v0 = vpop.f32.mrb[16].mxu1 }
 0x11d   :  { %v287_v1 = vadd.f32 %v2525_v30, %v286_v0  ;;  %v1410_v3 = vpop.f32.mrb[17].mxu1 }
 0x11f   :  { %318 = vst [vmem:[#allocation3 + $0x40] sm:$0xff] %v287_v1 }
 0x120   :  { %v291_v5 = vpop.f32.mrb[18].mxu1 }
 0x121   :  { %v292_v7 = vadd.f32 %v2525_v30, %v291_v5  ;;  %v1413_v9 = vpop.f32.mrb[19].mxu1 }
 0x123   :  { %v2028_v41 = vpop.eup %2027  ;;  %319 = vst [vmem:[#allocation3 + $0x48] sm:$0xff] %v292_v7 }
 0x124   :  { %1491 = vmatmul.mubr.f32.vlgmr.msra.gmra.mrb[26].mxu1 %v2028_v41  ;;  %v296_v10 = vpop.f32.mrb[20].mxu1 }
 0x125   :  { %1860 = vmatpush3.bf16.msra.mxu1 %v2326_v47  ;;  %1560 = vmatprep.mubr.msk.f32.mxu1 %vm2128_vm0, %v2129_v6  ;;  %v297_v12 = vadd.f32 %v2525_v30, %v296_v10  ;;  %v1416_v13 = vpop.f32.mrb[21].mxu1 }
 0x126   :  { %1861 = vmatprep.subr.bf16.mxu1 %v2127_v2 }
 0x127   :  { %320 = vst [vmem:[#allocation3 + $0x50] sm:$0xff] %v297_v12 }
 0x128   :  { %v301_v15 = vpop.f32.mrb[22].mxu1 }
 0x129   :  { %1863 = vmatpush3.bf16.msra.mxu1 %v2343_v53  ;;  %v302_v16 = vadd.f32 %v2525_v30, %v301_v15  ;;  %v1419_v17 = vpop.f32.mrb[23].mxu1 }
 0x12a   :  { %1864 = vmatprep.subr.bf16.mxu1 %v2127_v2 }
 0x12b   :  { %321 = vst [vmem:[#allocation3 + $0x58] sm:$0xff] %v302_v16 }
 0x12c   :  { %v306_v18 = vpop.f32.mrb[24].mxu1 }
 0x12d   :  { %1866 = vmatpush3.bf16.msra.mxu1 %v2362_v59  ;;  %v307_v19 = vadd.f32 %v2525_v30, %v306_v18  ;;  %v1422_v20 = vpop.f32.mrb[25].mxu1  ;;  %v631_v30 = vld [vmem:[#allocation2 + $0x4] sm:$0x1] }
 0x12e   :  { %1867 = vmatprep.subr.bf16.mxu1 %v2127_v2 }
 0x12f   :  { %322 = vst [vmem:[#allocation3 + $0x60] sm:$0xff] %v307_v19 }
 0x131   :  { %1869 = vmatpush3.bf16.msra.mxu1 %v2376_v63 }
 0x132   :  { %1870 = vmatprep.subr.bf16.mxu1 %v2127_v2 }
 0x135   :  { %1872 = vmatpush3.bf16.msra.mxu1 %v2393_v4 }
 0x136   :  { %1873 = vmatprep.subr.bf16.mxu1 %v2127_v2 }
 0x139   :  { %1875 = vmatpush3.bf16.msra.mxu1 %v2407_v8 }
 0x13a   :  { %1876 = vmatprep.subr.bf16.mxu1 %v2127_v2 }
 0x13d   :  { %1878 = vmatpush3.bf16.msra.mxu1 %v2419_v11 }
 0x13e   :  { %1879 = vmatprep.subr.bf16.mxu1 %v2127_v2 }
 0x141   :  { %1881 = vmatpush3.bf16.msra.mxu1 %v2431_v14 }
 0x1f7   :  { %v479_v22 = vpop.f32.mrb[26].mxu1 }
 0x1f8   :  { %v483_v23 = vadd.f32 %v479_v22, %v412_v21  ;;  %v1492_v24 = vpop.f32.mrb[27].mxu1 }
 0x1fa   :  { %2029 = vtanh.f32 %v483_v23 }
 0x204   :  { %v2030_v25 = vpop.eup %2029 }
 0x205   :  { %1526 = vmatmul.mubr.f32.vlgmr.msra.gmra.mrb[4].mxu0 %v2030_v25 }
 0x206   :  { %1884 = vmatpush3.bf16.msra.mxu0 %v2326_v47  ;;  %1595 = vmatprep.mubr.msk.f32.mxu0 %vm2128_vm0, %v2129_v6  ;;  %v485_v47 = vld [vmem:[#allocation2 + $0x2] sm:$0x1] }
 0x207   :  { %1885 = vmatprep.subr.bf16.mxu0 %v2127_v2 }
 0x20a   :  { %1887 = vmatpush3.bf16.msra.mxu0 %v2343_v53 }
 0x20b   :  { %1888 = vmatprep.subr.bf16.mxu0 %v2127_v2 }
 0x20e   :  { %1890 = vmatpush3.bf16.msra.mxu0 %v2362_v59 }
 0x20f   :  { %1891 = vmatprep.subr.bf16.mxu0 %v2127_v2 }
 0x212   :  { %1893 = vmatpush3.bf16.msra.mxu0 %v2376_v63 }
 0x213   :  { %1894 = vmatprep.subr.bf16.mxu0 %v2127_v2 }
 0x216   :  { %1896 = vmatpush3.bf16.msra.mxu0 %v2393_v4  ;;  %v558_v4 = vld [vmem:[#allocation2 + $0x3] sm:$0x1] }
 0x217   :  { %1897 = vmatprep.subr.bf16.mxu0 %v2127_v2 }
 0x21a   :  { %1899 = vmatpush3.bf16.msra.mxu0 %v2407_v8 }
 0x21b   :  { %1900 = vmatprep.subr.bf16.mxu0 %v2127_v2 }
 0x21e   :  { %1902 = vmatpush3.bf16.msra.mxu0 %v2419_v11 }
 0x21f   :  { %1903 = vmatprep.subr.bf16.mxu0 %v2127_v2 }
 0x222   :  { %1905 = vmatpush3.bf16.msra.mxu0 %v2431_v14 }
 0x2d8   :  { %v552_v53 = vpop.f32.mrb[4].mxu0 }
 0x2d9   :  { %v556_v59 = vadd.f32 %v552_v53, %v485_v47  ;;  %v1527_v63 = vpop.f32.mrb[5].mxu0 }
 0x2db   :  { %2031 = vtanh.f32 %v556_v59 }
 0x2e5   :  { %v2032_v26 = vpop.eup %2031 }
 0x2e6   :  { %1561 = vmatmul.mubr.f32.vlgmr.msra.gmra.mrb[28].mxu1 %v2032_v26 }
 0x3b9   :  { %v625_v27 = vpop.f32.mrb[28].mxu1 }
 0x3ba   :  { %v629_v28 = vadd.f32 %v625_v27, %v558_v4  ;;  %v1562_v29 = vpop.f32.mrb[29].mxu1 }
 0x3bc   :  { %2033 = vtanh.f32 %v629_v28 }
 0x3c6   :  { %v2034_v8 = vpop.eup %2033 }
 0x3c7   :  { %1596 = vmatmul.mubr.f32.vlgmr.msra.gmra.mrb[6].mxu0 %v2034_v8 }
 0x49a   :  { %v698_v11 = vpop.f32.mrb[6].mxu0 }
 0x49b   :  { %v702_v31 = vadd.f32 %v698_v11, %v631_v30  ;;  %v1597_v32 = vpop.f32.mrb[7].mxu0 }
 0x49d   :  { %2035 = vtanh.f32 %v702_v31 }
 0x4a7   :  { %v2574_v14 = vpop.eup %2035 }
 0x4a8 LB: > { %v713_v34 = vld [vmem:[%s2862_s6] sm:$0xff]  ;;  %v714_v35 = vld [vmem:[%s2862_s6 + $0x8] sm:$0xff]  ;;  %v715_v36 = vld [vmem:[%s2862_s6 + $0x10] sm:$0xff]  ;;  %v2130_v37 = vmov 0.0|0.0   ;;  %vm2131_vm1 = vmmov 0   ;;  %v2132_v40 = vmov 0.0   ;;  %s2125_s1 = sphi %s2576_s1, %s709_s1   ;;  %v2121_v33 = vphi %v2119_v33, %v2120_v33  }
 0x4a9   : > { %1906 = vmatprep.subr.bf16.mxu0 %v2130_v37  ;;  %v1907_v38 = vpack.c.bf16 %v714_v35, %v713_v34  ;;  %v716_v39 = vld [vmem:[%s2862_s6 + $0x18] sm:$0xff]  ;;  %1630 = vmatprep.mubr.msk.f32.mxu0 %vm2131_vm1, %v2132_v40  ;;  %v717_v42 = vld [vmem:[%s2862_s6 + $0x20] sm:$0xff]  ;;  %v718_v43 = vld [vmem:[%s2862_s6 + $0x28] sm:$0xff]  ;;  %s711_s20 = scalar_lea.vmem [#allocation3], %s2125_s1  ;;  %s709_s1 = sadd.s32 1, %s2125_s1  }
 0x4aa   : > { %v1910_v41 = vpack.c.bf16 %v716_v39, %v715_v36  ;;  %v1913_v44 = vpack.c.bf16 %v718_v43, %v717_v42  ;;  %v719_v45 = vld [vmem:[%s2862_s6 + $0x30] sm:$0xff]  ;;  %v720_v46 = vld [vmem:[%s2862_s6 + $0x38] sm:$0xff]  ;;  %v721_v49 = vld [vmem:[%s2862_s6 + $0x40] sm:$0xff]  ;;  %p706_p0 = scmp.ge.s32.totalorder %s709_s1, 100  }
 0x4ab   : > { %1908 = vmatpush3.bf16.msra.mxu0 %v1907_v38  ;;  %v1916_v48 = vpack.c.bf16 %v720_v46, %v719_v45  ;;  %v722_v50 = vld [vmem:[%s2862_s6 + $0x48] sm:$0xff]  ;;  %v723_v52 = vld [vmem:[%s2862_s6 + $0x50] sm:$0xff]  ;;  %v724_v54 = vld [vmem:[%s2862_s6 + $0x58] sm:$0xff]  ;;  %1954 = vmatprep.subr.bf16.mxu1 (%p706_p0), %v2127_v2  ;;  %801 = vst [vmem:[#allocation4] sm:$0x1] (%p706_p0), %v2574_v14  ;;  %s2133_s3 = smov (%p706_p0), [#allocation6]  }
 0x4ac   : > { %1909 = vmatprep.subr.bf16.mxu0 %v2130_v37  ;;  %v1919_v51 = vpack.c.bf16 %v722_v50, %v721_v49  ;;  %v1922_v55 = vpack.c.bf16 %v724_v54, %v723_v52  ;;  %v725_v56 = vld [vmem:[%s2862_s6 + $0x60] sm:$0xff]  ;;  %v726_v57 = vld [vmem:[%s2862_s6 + $0x68] sm:$0xff]  ;;  %v727_v60 = vld [vmem:[%s2862_s6 + $0x70] sm:$0xff]  ;;  %1700 = vmatprep.mubr.msk.f32.mxu1 (%p706_p0), %vm2128_vm0, %v2129_v6  ;;  %s2134_s23 = smov (%p706_p0), [#allocation4]  }
 0x4ad   : > { %v1925_v58 = vpack.c.bf16 %v726_v57, %v725_v56  ;;  %v728_v61 = vld [vmem:[%s2862_s6 + $0x78] sm:$0xff]  ;;  %v712_v0 = vld [vmem:[%s711_s20] sm:$0x1]  ;;  %v820_v10 = vld [vmem:[%s2865_s9 + $0x8] sm:$0xff] (%p706_p0)  ;;  %s1072_s24 = sshll.u32 (%p706_p0), %s2134_s23, 4  ;;  %s1073_s24 = int_to_ptr.vmem [resolvable:$true] %s1072_s24 }
 0x4ae   : > { %v1928_v62 = vpack.c.bf16 %v728_v61, %v727_v60  ;;  %v819_v9 = vld [vmem:[%s2865_s9] sm:$0xff] (%p706_p0)  ;;  %v804_v15 = vld [vmem:[%s2864_s8 + $0x8] sm:$0xff] (%p706_p0)  ;;  %v821_v16 = vld [vmem:[%s2865_s9 + $0x10] sm:$0xff] (%p706_p0) }
 0x4af   : > { %1911 = vmatpush3.bf16.msra.mxu0 %v1910_v41  ;;  %v803_v12 = vld [vmem:[%s2864_s8] sm:$0xff] (%p706_p0)  ;;  %v1931_v13 = vpack.c.bf16 (%p706_p0), %v820_v10, %v819_v9  ;;  %v822_v17 = vld [vmem:[%s2865_s9 + $0x18] sm:$0xff] (%p706_p0)  ;;  %v805_v19 = vld [vmem:[%s2864_s8 + $0x10] sm:$0xff] (%p706_p0) }
 0x4b0   : > { %1912 = vmatprep.subr.bf16.mxu0 %v2130_v37  ;;  %v1955_v18 = vpack.c.bf16 (%p706_p0), %v804_v15, %v803_v12  ;;  %v806_v20 = vld [vmem:[%s2864_s8 + $0x18] sm:$0xff] (%p706_p0)  ;;  %v1934_v21 = vpack.c.bf16 (%p706_p0), %v822_v17, %v821_v16  ;;  %v823_v23 = vld [vmem:[%s2865_s9 + $0x20] sm:$0xff] (%p706_p0)  ;;  %v824_v24 = vld [vmem:[%s2865_s9 + $0x28] sm:$0xff] (%p706_p0) }
 0x4b1   :  { %v1958_v22 = vpack.c.bf16 (%p706_p0), %v806_v20, %v805_v19  ;;  %v807_v25 = vld [vmem:[%s2864_s8 + $0x20] sm:$0xff] (%p706_p0)  ;;  %v808_v47 = vld [vmem:[%s2864_s8 + $0x28] sm:$0xff] (%p706_p0)  ;;  %v1937_v53 = vpack.c.bf16 (%p706_p0), %v824_v24, %v823_v23  ;;  %v825_v63 = vld [vmem:[%s2865_s9 + $0x30] sm:$0xff] (%p706_p0) }
 0x4b2   :  { %1956 = vmatpush3.bf16.msra.mxu1 (%p706_p0), %v1955_v18  ;;  %v1961_v59 = vpack.c.bf16 (%p706_p0), %v808_v47, %v807_v25  ;;  %v826_v26 = vld [vmem:[%s2865_s9 + $0x38] sm:$0xff] (%p706_p0)  ;;  %v809_v4 = vld [vmem:[%s2864_s8 + $0x30] sm:$0xff] (%p706_p0)  ;;  %v827_v8 = vld [vmem:[%s2865_s9 + $0x40] sm:$0xff] (%p706_p0) }
 0x4b3   : > { %1914 = vmatpush3.bf16.msra.mxu0 %v1913_v44  ;;  %1957 = vmatprep.subr.bf16.mxu1 (%p706_p0), %v2127_v2  ;;  %v810_v27 = vld [vmem:[%s2864_s8 + $0x38] sm:$0xff] (%p706_p0)  ;;  %v1940_v28 = vpack.c.bf16 (%p706_p0), %v826_v26, %v825_v63  ;;  %v828_v30 = vld [vmem:[%s2865_s9 + $0x48] sm:$0xff] (%p706_p0)  ;;  %v811_v11 = vld [vmem:[%s2864_s8 + $0x40] sm:$0xff] (%p706_p0) }
 0x4b4   : > { %1915 = vmatprep.subr.bf16.mxu0 %v2130_v37  ;;  %v1964_v29 = vpack.c.bf16 (%p706_p0), %v810_v27, %v809_v4  ;;  %v812_v31 = vld [vmem:[%s2864_s8 + $0x48] sm:$0xff] (%p706_p0)  ;;  %v1943_v32 = vpack.c.bf16 (%p706_p0), %v828_v30, %v827_v8  ;;  %v829_v34 = vld [vmem:[%s2865_s9 + $0x50] sm:$0xff] (%p706_p0)  ;;  %v830_v35 = vld [vmem:[%s2865_s9 + $0x58] sm:$0xff] (%p706_p0) }
 0x4b5   :  { %v813_v36 = vld [vmem:[%s2864_s8 + $0x50] sm:$0xff] (%p706_p0)  ;;  %v1946_v38 = vpack.c.bf16 (%p706_p0), %v830_v35, %v829_v34  ;;  %v831_v40 = vld [vmem:[%s2865_s9 + $0x60] sm:$0xff] (%p706_p0)  ;;  %v832_v41 = vld [vmem:[%s2865_s9 + $0x68] sm:$0xff] (%p706_p0) }
 0x4b6   :  { %1959 = vmatpush3.bf16.msra.mxu1 (%p706_p0), %v1958_v22  ;;  %v815_v42 = vld [vmem:[%s2864_s8 + $0x60] sm:$0xff] (%p706_p0)  ;;  %v816_v43 = vld [vmem:[%s2864_s8 + $0x68] sm:$0xff] (%p706_p0)  ;;  %v1949_v44 = vpack.c.bf16 (%p706_p0), %v832_v41, %v831_v40  ;;  %v833_v46 = vld [vmem:[%s2865_s9 + $0x70] sm:$0xff] (%p706_p0) }
 0x4b7   : > { %1917 = vmatpush3.bf16.msra.mxu0 %v1916_v48  ;;  %1960 = vmatprep.subr.bf16.mxu1 (%p706_p0), %v2127_v2  ;;  %v1973_v45 = vpack.c.bf16 (%p706_p0), %v816_v43, %v815_v42  ;;  %v834_v48 = vld [vmem:[%s2865_s9 + $0x78] sm:$0xff] (%p706_p0)  ;;  %v817_v49 = vld [vmem:[%s2864_s8 + $0x70] sm:$0xff] (%p706_p0)  ;;  %v978_v54 = vld [vmem:[%s2867_s11] sm:$0xff] (%p706_p0) }
 0x4b8   : > { %1918 = vmatprep.subr.bf16.mxu0 %v2130_v37  ;;  %v818_v50 = vld [vmem:[%s2864_s8 + $0x78] sm:$0xff] (%p706_p0)  ;;  %v980_v57 = vld [vmem:[%s2867_s11 + $0x10] sm:$0xff] (%p706_p0)  ;;  %v982_v61 = vld [vmem:[%s2867_s11 + $0x20] sm:$0xff] (%p706_p0) }
 0x4b9   :  { %v1976_v52 = vpack.c.bf16 (%p706_p0), %v818_v50, %v817_v49  ;;  %v988_v9 = vld [vmem:[%s2867_s11 + $0x50] sm:$0xff] (%p706_p0)  ;;  %v989_v10 = vld [vmem:[%s2867_s11 + $0x58] sm:$0xff] (%p706_p0)  ;;  %v991_v15 = vld [vmem:[%s2867_s11 + $0x68] sm:$0xff] (%p706_p0) }
 0x4ba   :  { %1962 = vmatpush3.bf16.msra.mxu1 (%p706_p0), %v1961_v59  ;;  %v1994_v12 = vpack.c.bf16 (%p706_p0), %v989_v10, %v988_v9  ;;  %v992_v17 = vld [vmem:[%s2867_s11 + $0x70] sm:$0xff] (%p706_p0)  ;;  %v993_v18 = vld [vmem:[%s2867_s11 + $0x78] sm:$0xff] (%p706_p0)  ;;  %v975_v22 = vld [vmem:[%s2866_s10] sm:$0x1] (%p706_p0) }
 0x4bb   : > { %1920 = vmatpush3.bf16.msra.mxu0 %v1919_v51  ;;  %1963 = vmatprep.subr.bf16.mxu1 (%p706_p0), %v2127_v2  ;;  %v1952_v51 = vpack.c.bf16 (%p706_p0), %v834_v48, %v833_v46  ;;  %v2000_v19 = vpack.c.bf16 (%p706_p0), %v993_v18, %v992_v17 }
 0x4bc   : > { %1921 = vmatprep.subr.bf16.mxu0 %v2130_v37 }
 0x4be   :  { %1965 = vmatpush3.bf16.msra.mxu1 (%p706_p0), %v1964_v29 }
 0x4bf   : > { %1923 = vmatpush3.bf16.msra.mxu0 %v1922_v55  ;;  %1966 = vmatprep.subr.bf16.mxu1 (%p706_p0), %v2127_v2  ;;  %v979_v55 = vld [vmem:[%s2867_s11 + $0x8] sm:$0xff] (%p706_p0) }
 0x4c0   : > { %1924 = vmatprep.subr.bf16.mxu0 %v2130_v37  ;;  %v1979_v56 = vpack.c.bf16 (%p706_p0), %v979_v55, %v978_v54 }
 0x4c3   : > { %1926 = vmatpush3.bf16.msra.mxu0 %v1925_v58  ;;  %v981_v58 = vld [vmem:[%s2867_s11 + $0x18] sm:$0xff] (%p706_p0) }
 0x4c4   : > { %1927 = vmatprep.subr.bf16.mxu0 %v2130_v37  ;;  %v814_v37 = vld [vmem:[%s2864_s8 + $0x58] sm:$0xff] (%p706_p0)  ;;  %v1982_v60 = vpack.c.bf16 (%p706_p0), %v981_v58, %v980_v57 }
 0x4c5   :  { %v1970_v39 = vpack.c.bf16 (%p706_p0), %v814_v37, %v813_v36 }
 0x4c7   : > { %1929 = vmatpush3.bf16.msra.mxu0 %v1928_v62  ;;  %v983_v62 = vld [vmem:[%s2867_s11 + $0x28] sm:$0xff] (%p706_p0) }
 0x4c8   :  { %1930 = vmatprep.subr.bf16.mxu0 (%p706_p0), %v2127_v2 }
 0x4ca   : > { %1631 = vmatmul.mubr.f32.vlgmr.msra.gmra.mrb[0].mxu0 %v2121_v33 }
 0x4cb   :  { %1665 = vmatprep.mubr.msk.f32.mxu0 (%p706_p0), %vm2128_vm0, %v2129_v6  ;;  %1932 = vmatpush3.bf16.msra.mxu0 (%p706_p0), %v1931_v13  ;;  %v990_v13 = vld [vmem:[%s2867_s11 + $0x60] sm:$0xff] (%p706_p0) }
 0x4cc   :  { %1933 = vmatprep.subr.bf16.mxu0 (%p706_p0), %v2127_v2  ;;  %v1997_v16 = vpack.c.bf16 (%p706_p0), %v991_v15, %v990_v13 }
 0x4cf   :  { %1935 = vmatpush3.bf16.msra.mxu0 (%p706_p0), %v1934_v21 }
 0x4d0   :  { %1936 = vmatprep.subr.bf16.mxu0 (%p706_p0), %v2127_v2 }
 0x4d3   :  { %1938 = vmatpush3.bf16.msra.mxu0 (%p706_p0), %v1937_v53 }
 0x4d4   :  { %1939 = vmatprep.subr.bf16.mxu0 (%p706_p0), %v2127_v2 }
 0x4d7   :  { %1941 = vmatpush3.bf16.msra.mxu0 (%p706_p0), %v1940_v28 }
 0x4d8   :  { %1942 = vmatprep.subr.bf16.mxu0 (%p706_p0), %v2127_v2 }
 0x4db   :  { %1944 = vmatpush3.bf16.msra.mxu0 (%p706_p0), %v1943_v32 }
 0x4dc   :  { %1945 = vmatprep.subr.bf16.mxu0 (%p706_p0), %v2127_v2 }
 0x4df   :  { %1947 = vmatpush3.bf16.msra.mxu0 (%p706_p0), %v1946_v38 }
 0x4e0   :  { %1948 = vmatprep.subr.bf16.mxu0 (%p706_p0), %v2127_v2 }
 0x4e3   :  { %1950 = vmatpush3.bf16.msra.mxu0 (%p706_p0), %v1949_v44 }
 0x4e4   :  { %1951 = vmatprep.subr.bf16.mxu0 (%p706_p0), %v2127_v2 }
 0x4e7   :  { %1953 = vmatpush3.bf16.msra.mxu0 (%p706_p0), %v1952_v51 }
 0x4e8   :  { %1978 = vmatprep.subr.bf16.mxu0 (%p706_p0), %v2127_v2 }
 0x59d   : > { %v795_v1 = vpop.f32.mrb[0].mxu0 }
 0x59e   : > { %v799_v3 = vadd.f32 %v795_v1, %v712_v0  ;;  %v1632_v5 = vpop.f32.mrb[1].mxu0  ;;  %v1985_v0 = vpack.c.bf16 (%p706_p0), %v983_v62, %v982_v61  ;;  %v985_v1 = vld [vmem:[%s2867_s11 + $0x38] sm:$0xff] (%p706_p0) }
 0x59f   :  { %v987_v5 = vld [vmem:[%s2867_s11 + $0x48] sm:$0xff] (%p706_p0) }
 0x5a0   : > { %2037 = vtanh.f32 %v799_v3 }
 0x5a6   :  { %708 = sbr.rel (!%p706_p0) target bundleno = 1192 (0x4a8), region = 96 }
 0x5aa   : > { %v2630_v33 = vpop.eup %2037  }
 0x5ab   : > { %v2872_v7 = vmov %v2630_v33 }
 0x5ac   : > { %v2120_v33 = vmov %v2872_v7   ;;  %802 = vst [vmem:[#allocation6] sm:$0x1] (%p706_p0), %v2872_v7  ;;  %1666 = vmatmul.mubr.f32.vlgmr.msra.gmra.mrb[0].mxu0 (%p706_p0), %v2872_v7 }
 0x5ad   :  { %v1967_v33 = vpack.c.bf16 %v812_v31, %v811_v11  ;;  %1980 = vmatpush3.bf16.msra.mxu0 %v1979_v56  ;;  %1735 = vmatprep.mubr.msk.f32.mxu0 %vm2128_vm0, %v2129_v6  ;;  %v986_v6 = vld [vmem:[%s2867_s11 + $0x40] sm:$0xff] }
 0x5ae   :  { %1981 = vmatprep.subr.bf16.mxu0 %v2127_v2  ;;  %v1991_v7 = vpack.c.bf16 %v987_v5, %v986_v6 }
 0x5af   :  { %1968 = vmatpush3.bf16.msra.mxu1 %v1967_v33 }
 0x5b0   :  { %1969 = vmatprep.subr.bf16.mxu1 %v2127_v2 }
 0x5b1   :  { %1983 = vmatpush3.bf16.msra.mxu0 %v1982_v60 }
 0x5b2   :  { %1984 = vmatprep.subr.bf16.mxu0 %v2127_v2 }
 0x5b3   :  { %1971 = vmatpush3.bf16.msra.mxu1 %v1970_v39 }
 0x5b4   :  { %1972 = vmatprep.subr.bf16.mxu1 %v2127_v2 }
 0x5b5   :  { %1986 = vmatpush3.bf16.msra.mxu0 %v1985_v0 }
 0x5b6   :  { %1987 = vmatprep.subr.bf16.mxu0 %v2127_v2 }
 0x5b7   :  { %1974 = vmatpush3.bf16.msra.mxu1 %v1973_v45 }
 0x5b8   :  { %1975 = vmatprep.subr.bf16.mxu1 %v2127_v2 }
 0x5bb   :  { %1977 = vmatpush3.bf16.msra.mxu1 %v1976_v52 }
 0x5be   :  { %1701 = vmatmul.mubr.f32.vlgmr.msra.gmra.mrb[0].mxu1 %v2574_v14  ;;  %v984_v14 = vld [vmem:[%s2867_s11 + $0x30] sm:$0xff]  ;;  %s1082_s11 = sshll.u32 %s2133_s3, 4  ;;  %s1083_s11 = int_to_ptr.vmem [resolvable:$true] %s1082_s11 }
 0x5bf   :  { %v1988_v3 = vpack.c.bf16 %v985_v1, %v984_v14  ;;  %s2041_s25 = scalar_lea.vmem %s1083_s11, 16  ;;  %s2045_s6 = scalar_lea.vmem %s1083_s11, 32 }
 0x5c0   :  { %p2042_p1 = scmp.ne.s32.totalorder %s1083_s11, %s2041_s25  ;;  %p2046_p2 = scmp.lt.s32.totalorder %s1083_s11, %s1083_s11 }
 0x5c1   :  { %1989 = vmatpush3.bf16.msra.mxu0 %v1988_v3  ;;  %p2047_p3 = scmp.lt.s32.totalorder %s2045_s6, %s2041_s25 }
 0x5c2   :  { %1990 = vmatprep.subr.bf16.mxu0 %v2127_v2 }
 0x5c3   :  { %p2048_p4 = por %p2047_p3, %p2046_p2 }
 0x5c5   :  { %1992 = vmatpush3.bf16.msra.mxu0 %v1991_v7  ;;  %p2049_p5 = pnand %p2048_p4, %p2042_p1 }
 0x5c6   :  { %1993 = vmatprep.subr.bf16.mxu0 %v2127_v2 }
 0x5c9   :  { %1995 = vmatpush3.bf16.msra.mxu0 %v1994_v12 }
 0x5ca   :  { %1996 = vmatprep.subr.bf16.mxu0 %v2127_v2 }
 0x5cd   :  { %1998 = vmatpush3.bf16.msra.mxu0 %v1997_v16 }
 0x5ce   :  { %1999 = vmatprep.subr.bf16.mxu0 %v2127_v2 }
 0x5d1   :  { %2001 = vmatpush3.bf16.msra.mxu0 %v2000_v19 }
 0x67f   :  { %v901_v20 = vpop.f32.mrb[0].mxu0 }
 0x680   :  { %v1667_v23 = vpop.f32.mrb[1].mxu0 }
 0x691   :  { %v971_v21 = vpop.f32.mrb[0].mxu1 }
 0x692   :  { %v972_v24 = vadd.f32 %v971_v21, %v901_v20  ;;  %v1702_v25 = vpop.f32.mrb[1].mxu1 }
 0x694   :  { %v976_v47 = vadd.f32 %v975_v22, %v972_v24 }
 0x696   :  { %2039 = vtanh.f32 %v976_v47 }
 0x6a0   :  { %v2040_v53 = vpop.eup %2039 }
 0x6a1   :  { %1736 = vmatmul.mubr.f32.vlgmr.msra.gmra.mrb[2].mxu0 %v2040_v53 }
 0x6a2   :  { %2052 = shalt.err (!%p2049_p5)
}
 0x6a3   :  { %s2053_s0 = scalar_lea.hbm %s2870_s14, 16 }
 0x6a4   :  { %p2054_p6 = scmp.ne.s32.totalorder %s2870_s14, %s2053_s0  ;;  %p2057_p7 = scmp.lt.u32.totalorder %s2053_s0, %s2870_s14 }
 0x6a6   :  { %p2059_p8 = pnand %p2057_p7, %p2054_p6 }
 0x6a8   :  { %2062 = shalt.err (!%p2059_p8)
}
 0x6a9   :  { %1085 = dma.vmem_to_hbm [thread:$0]  %s1083_s11, 16, %s2870_s14, [#allocation7]  }
 0x6aa   :  { %s2063_s30 = scalar_lea.vmem %s1073_s24, 16  ;;  %s2067_s2 = scalar_lea.vmem %s1073_s24, 32 }
 0x6ab   :  { %p2064_p9 = scmp.ne.s32.totalorder %s1073_s24, %s2063_s30  ;;  %p2068_p10 = scmp.lt.s32.totalorder %s1073_s24, %s1073_s24 }
 0x6ac   :  { %p2069_p11 = scmp.lt.s32.totalorder %s2067_s2, %s2063_s30 }
 0x6ae   :  { %p2070_p12 = por %p2069_p11, %p2068_p10 }
 0x6b0   :  { %p2071_p13 = pnand %p2070_p12, %p2064_p9 }
 0x6b2   :  { %2074 = shalt.err (!%p2071_p13)
}
 0x6b3   :  { %s2075_s5 = scalar_lea.hbm %s2869_s13, 16 }
 0x6b4   :  { %p2076_p0 = scmp.ne.s32.totalorder %s2869_s13, %s2075_s5  ;;  %p2079_p1 = scmp.lt.u32.totalorder %s2075_s5, %s2869_s13 }
 0x6b6   :  { %p2081_p2 = pnand %p2079_p1, %p2076_p0 }
 0x6b8   :  { %2084 = shalt.err (!%p2081_p2)
}
 0x6b9   :  { %1075 = dma.vmem_to_hbm [thread:$0]  %s1073_s24, 16, %s2869_s13, [#allocation5]   ;;  %v994_v2 = vld [vmem:[%s2868_s12] sm:$0x1] }
 0x6ba   :  { %s2135_s3 = smov [#allocation8]  }
 0x6bb   :  { %s1092_s11 = sshll.u32 %s2135_s3, 4  ;;  %s1093_s11 = int_to_ptr.vmem [resolvable:$true] %s1092_s11 }
 0x6bc   :  { %s2085_s23 = scalar_lea.vmem %s1093_s11, 16  ;;  %s2089_s25 = scalar_lea.vmem %s1093_s11, 32 }
 0x6bd   :  { %p2086_p3 = scmp.ne.s32.totalorder %s1093_s11, %s2085_s23  ;;  %p2090_p4 = scmp.lt.s32.totalorder %s1093_s11, %s1093_s11 }
 0x6be   :  { %p2091_p5 = scmp.lt.s32.totalorder %s2089_s25, %s2085_s23 }
 0x6c0   :  { %p2092_p6 = por %p2091_p5, %p2090_p4 }
 0x6c2   :  { %p2093_p7 = pnand %p2092_p6, %p2086_p3 }
 0x774   :  { %v1061_v59 = vpop.f32.mrb[2].mxu0 }
 0x775   :  { %v1062_v63 = vadd.f32 %v1061_v59, %v994_v2  ;;  %v1737_v26 = vpop.f32.mrb[3].mxu0 }
 0x777   :  { %1065 = vst [vmem:[#allocation8] sm:$0x1] %v1062_v63 }
 0x778   :  { %2096 = shalt.err (!%p2093_p7)
}
 0x779   :  { %s2097_s6 = scalar_lea.hbm %s2871_s15, 16 }
 0x77a   :  { %p2098_p8 = scmp.ne.s32.totalorder %s2871_s15, %s2097_s6  ;;  %p2101_p9 = scmp.lt.u32.totalorder %s2097_s6, %s2871_s15 }
 0x77c   :  { %p2103_p10 = pnand %p2101_p9, %p2098_p8 }
 0x77e   :  { %2106 = shalt.err (!%p2103_p10)
}
 0x77f   :  { %1095 = dma.vmem_to_hbm [thread:$0]  %s1093_s11, 16, %s2871_s15, [#allocation7]  }
 0x780   :  { %2115 = dma.done.wait [#allocation5], 16  }
 0x781   :  { %2116 = vsyncadd [#allocation5], 4294967280 }
 0x782   :  { %2117 = dma.done.wait [#allocation7], 32  }
 0x783   :  { %2118 = vsyncadd [#allocation7], 4294967264 }
 0x784   :  { %1105 = vsyncpa [#allocation5], 1 }
 0x785   :  { %1106 = vsyncpa [#allocation7], 1 }

</bundles_post_ra>
